<compile_context>
chip_gen: v6e
topology: v6e:2x2x1
jax: 0.10.0
libtpu: 0.0.40
codegen_flags: <defaults>
</compile_context>

<pallas_src>
import math
import functools

import jax
import jax.numpy as jnp
import numpy as np
from jax.experimental import pallas as pl
from jax.experimental.pallas import tpu as pltpu


# ---------------------------------------------------------------------------
# Parameter / buffer construction (mirrors PositionalEncoding.__init__)
# ---------------------------------------------------------------------------
def make_positional_encoding(d_model: int, max_len: int = 5000) -> jnp.ndarray:
    """Builds the `pe` buffer: shape (max_len, 1, d_model), float32."""
    position = jnp.arange(max_len, dtype=jnp.float32)[:, None]            # (L, 1)
    div_term = jnp.exp(
        jnp.arange(0, d_model, 2, dtype=jnp.float32) * (-math.log(10000.0) / d_model)
    )                                                                      # (D/2,)
    pe = jnp.zeros((max_len, d_model), dtype=jnp.float32)
    pe = pe.at[:, 0::2].set(jnp.sin(position * div_term))
    pe = pe.at[:, 1::2].set(jnp.cos(position * div_term))
    return pe[:, None, :]                                                  # (L, 1, D)


# ---------------------------------------------------------------------------
# Kernels
# ---------------------------------------------------------------------------
def _pe_add_kernel(x_ref, pe_ref, o_ref):
    # x_ref: (TS, B, D), pe_ref: (TS, 1, D) -> broadcast add over batch.
    o_ref[...] = x_ref[...] + pe_ref[...]


def _pe_add_dropout_kernel(x_ref, pe_ref, u_ref, o_ref, *, p):
    # Training-mode path: add PE, then inverted dropout with rate p.
    # u_ref holds uniform [0,1) randoms generated wrapper-side (portable:
    # works on real TPU and in interpret mode, unlike pltpu.prng_*).
    # TODO(synk): RNG stream differs from torch.nn.Dropout (bitwise match impossible).
    y = x_ref[...] + pe_ref[...]
    keep = u_ref[...] >= jnp.float32(p)
    scale = jnp.float32(1.0 / (1.0 - p))
    o_ref[...] = jnp.where(keep, y * scale, jnp.zeros_like(y)).astype(o_ref.dtype)


# ---------------------------------------------------------------------------
# Wrapper (forward pass)
# ---------------------------------------------------------------------------
def _pick_seq_tile(S: int, B: int, D: int, itemsize: int) -> int:
    """Pick how many sequence rows to process per grid step.

    Target ~4 MiB per x-sized block so the double-buffered working set
    (x, out, optional mask, pe) stays well under 64 MiB (v7x physical VMEM)
    while being large enough to approach the HBM roofline.
    """
    target_block_bytes = 4 * 1024 * 1024
    rows = max(1, target_block_bytes // max(1, B * D * itemsize))
    if rows >= S:
        return S                       # single (or few) block(s): full extent
    return max(8, (rows // 8) * 8)     # keep sublane-friendly multiple of 8


def positional_encoding_forward(x, pe, *, p: float = 0.1,
                                training: bool = False, rng_key=None):
    """x: (S, B, D) float32. pe: (max_len, 1, D). Returns (S, B, D)."""
    S, B, D = x.shape
    pe_slice = pe[:S].astype(x.dtype)                 # (S, 1, D) == self.pe[:x.size(0), :]
    out_shape = jax.ShapeDtypeStruct((S, B, D), x.dtype)
    itemsize = jnp.dtype(x.dtype).itemsize

    use_dropout = bool(training) and p > 0.0
    if use_dropout and p >= 1.0:
        # torch.nn.Dropout(p=1.0) zeroes everything.
        return jnp.zeros((S, B, D), x.dtype)

    TS = _pick_seq_tile(S, B, D, itemsize)
    grid = (pl.cdiv(S, TS),)

    x_spec = pl.BlockSpec((TS, B, D), lambda i: (i, 0, 0))
    pe_spec = pl.BlockSpec((TS, 1, D), lambda i: (i, 0, 0))
    o_spec = pl.BlockSpec((TS, B, D), lambda i: (i, 0, 0))

    # VMEM budget: double-buffered big streams (x, out, [mask]) + pe block,
    # plus headroom.  Cap so the request stays valid on v7x (64 MiB physical).
    big_block = TS * B * D * itemsize
    pe_block = TS * D * itemsize
    n_big = 3 if use_dropout else 2
    vmem_limit = int(min(64 * 1024 * 1024,
                         max(16 * 1024 * 1024,
                             2 * (n_big * big_block + pe_block) + (4 << 20))))
    cparams = pltpu.CompilerParams(
        dimension_semantics=("parallel",),
        vmem_limit_bytes=vmem_limit,
    )

    if use_dropout:
        if rng_key is None:
            rng_key = jax.random.PRNGKey(0)
        u = jax.random.uniform(rng_key, (S, B, D), dtype=jnp.float32)
        kernel = functools.partial(_pe_add_dropout_kernel, p=float(p))
        return pl.pallas_call(
            kernel,
            out_shape=out_shape,
            grid=grid,
            in_specs=[x_spec, pe_spec, x_spec],
            out_specs=o_spec,
            input_output_aliases={0: 0},       # output aliases x (x is donated)
            compiler_params=cparams,
        )(x, pe_slice, u)
    else:
        # Eval mode: dropout is identity (matches module.eval()).
        return pl.pallas_call(
            _pe_add_kernel,
            out_shape=out_shape,
            grid=grid,
            in_specs=[x_spec, pe_spec],
            out_specs=o_spec,
            input_output_aliases={0: 0},       # output aliases x (x is donated)
            compiler_params=cparams,
        )(x, pe_slice)


# ---------------------------------------------------------------------------
# Main
# ---------------------------------------------------------------------------
if __name__ == "__main__":
    S, B, D = 8, 2, 32          # seq_len, batch, d_model
    max_len = 5000
    p = 0.1

    key = jax.random.PRNGKey(0)
    x = jax.random.normal(key, (S, B, D), dtype=jnp.float32)

    pe = make_positional_encoding(D, max_len)

    # Pure-JAX references (computed BEFORE any kernel call, since the kernel
    # donates its x operand via input_output_aliases).
    ref_eval = x + pe[:S]
    drop_key = jax.random.PRNGKey(123)
    u_ref = jax.random.uniform(drop_key, (S, B, D), dtype=jnp.float32)
    ref_train = jnp.where(u_ref >= jnp.float32(p),
                          ref_eval * jnp.float32(1.0 / (1.0 - p)),
                          jnp.zeros_like(ref_eval))

    # Fresh copies for the (donating) kernel calls.
    x_eval = x + 0.0
    x_train = x + 0.0

    # Forward (eval mode -> dropout is identity, deterministic check).
    out = positional_encoding_forward(x_eval, pe, p=p, training=False)
    out = jax.block_until_ready(out)
    np.testing.assert_allclose(np.asarray(out), np.asarray(ref_eval),
                               rtol=1e-6, atol=1e-6)

    # Training mode (dropout) — deterministic given rng_key.
    out_train = positional_encoding_forward(x_train, pe, p=p, training=True,
                                            rng_key=drop_key)
    out_train = jax.block_until_ready(out_train)
    np.testing.assert_allclose(np.asarray(out_train), np.asarray(ref_train),
                               rtol=1e-6, atol=1e-6)

    print("KERNEL_OK")
</pallas_src>

<mosaic_0001>
module attributes {stable_mosaic.version = 11 : i64} {
  func.func @_pe_add_kernel(%arg0: i32, %arg1: memref<8x2x32xf32, #tpu.memory_space<vmem>>, %arg2: memref<8x1x32xf32, #tpu.memory_space<vmem>>, %arg3: memref<8x2x32xf32, #tpu.memory_space<vmem>>) attributes {dimension_semantics = [#tpu.dimension_semantics<parallel>], iteration_bounds = array<i64: 1>, scalar_prefetch = 0 : i64, scratch_operands = 0 : i64, tpu.core_type = #tpu.core_type<tc>, window_params = [{transform_indices = @transform_0, window_bounds = array<i64: 8, 2, 32>}, {transform_indices = @transform_1, window_bounds = array<i64: 8, 1, 32>}, {transform_indices = @transform_2, window_bounds = array<i64: 8, 2, 32>}]} {
    %c0 = arith.constant 0 : index
    %c0_0 = arith.constant 0 : index
    %c0_1 = arith.constant 0 : index
    %0 = vector.load %arg1[%c0, %c0_0, %c0_1] : memref<8x2x32xf32, #tpu.memory_space<vmem>>, vector<8x2x32xf32>
    %c0_2 = arith.constant 0 : index
    %c0_3 = arith.constant 0 : index
    %c0_4 = arith.constant 0 : index
    %1 = vector.load %arg2[%c0_2, %c0_3, %c0_4] : memref<8x1x32xf32, #tpu.memory_space<vmem>>, vector<8x1x32xf32>
    %2 = vector.broadcast %1 : vector<8x1x32xf32> to vector<8x2x32xf32>
    %3 = arith.addf %0, %2 : vector<8x2x32xf32>
    %c0_5 = arith.constant 0 : index
    %c0_6 = arith.constant 0 : index
    %c0_7 = arith.constant 0 : index
    %4 = vector.load %arg3[%c0_5, %c0_6, %c0_7] : memref<8x2x32xf32, #tpu.memory_space<vmem>>, vector<8x2x32xf32>
    tpu.vector_store %arg3[%c0_5, %c0_6, %c0_7], %3 {strides = array<i32>} : memref<8x2x32xf32, #tpu.memory_space<vmem>>, vector<8x2x32xf32>,
    return
  }
  func.func @transform_0(%arg0: i32) -> (i32, i32, i32) {
    %c0_i32 = arith.constant 0 : i32
    %c0_i32_0 = arith.constant 0 : i32
    %c0_i32_1 = arith.constant 0 : i32
    return %arg0, %c0_i32, %c0_i32_0 : i32, i32, i32
  }
  func.func @transform_1(%arg0: i32) -> (i32, i32, i32) {
    %c0_i32 = arith.constant 0 : i32
    %c0_i32_0 = arith.constant 0 : i32
    %c0_i32_1 = arith.constant 0 : i32
    return %arg0, %c0_i32, %c0_i32_0 : i32, i32, i32
  }
  func.func @transform_2(%arg0: i32) -> (i32, i32, i32) {
    %c0_i32 = arith.constant 0 : i32
    %c0_i32_0 = arith.constant 0 : i32
    %c0_i32_1 = arith.constant 0 : i32
    return %arg0, %c0_i32, %c0_i32_0 : i32, i32, i32
  }
}

</mosaic_0001>

<bundles_post_ra>
// kernel: tpu_custom_call.1
= control target key start
LH: loop header
LB: loop body
LE: loop exit
PB: predicated region body
PF: predicated region fallthrough
CT: control target
= control target key end

     0   :  { %7 = vsyncpa [#allocation3], 0  ;;  %s246_s0 = inlined_call_operand.hbm [shape: f32[8,2,32], index: 0, kind: input, shape index: {}, may-alias: {0,2}]   ;;  %s247_s1 = inlined_call_operand.vmem [shape: f32[8,1,32], index: 1, kind: input, shape index: {}]   ;;  %s248_s2 = inlined_call_operand.hbm [shape: f32[8,2,32], index: 2, kind: output, shape index: {}, may-alias: {0,2}]  }
   0x1   :  { %8 = vsyncpa [#allocation4], 0  ;;  %s180_s9 = smov [#allocation2]  }
   0x2   :  { %s14_s10 = sshll.u32 %s180_s9, 4  ;;  %s15_s10 = int_to_ptr.vmem [resolvable:$true] %s14_s10 }
   0x3   :  { %s144_s11 = scalar_lea.vmem %s15_s10, 256  ;;  %p149_p1 = scmp.lt.s32.totalorder %s15_s10, %s15_s10 }
   0x4   :  { %p145_p0 = scmp.ne.s32.totalorder %s15_s10, %s144_s11  ;;  %p150_p2 = scmp.lt.s32.totalorder %s144_s11, %s144_s11 }
   0x6   :  { %p151_p3 = por %p150_p2, %p149_p1 }
   0x8   :  { %p152_p4 = pnand %p151_p3, %p145_p0 }
   0xa   :  { %155 = shalt.err (!%p152_p4)
}
   0xb   :  { %s181_s12 = smov 32   ;;  %s182_s13 = smov 2  }
   0xc   :  { %20 = dma.hbm_to_vmem [thread:$0]  %s246_s0, 256, %s15_s10, [#allocation3], %s181_s12, %s181_s12, %s182_s13  }
   0xd   :  { %176 = dma.done.wait [#allocation3], 256  }
   0xe   :  { %177 = vsyncadd [#allocation3], 4294967040  ;;  %vm98_vm0 = vcmask 254976   ;;  %s183_s16 = smov [#allocation5]   ;;  %v26_v0 = vld [vmem:[#allocation2] sm:$0x3] }
   0xf   :  { %s205_s17 = sshll.u32 %s183_s16, 4  ;;  %v124_v1 = vld [vmem:[%s247_s1] ss:$0 sm:$0xff]  ;;  %v27_v2 = vld [vmem:[#allocation2 + $0x2] sm:$0x3]  ;;  %s113_s17 = int_to_ptr.vmem [resolvable:$true] %s205_s17 }
  0x10   :  { %v90_v3 = vadd.f32 %v124_v1, %v26_v0  ;;  %v125_v4 = vld [vmem:[%s247_s1 + $0x1] ss:$0 sm:$0xff]  ;;  %v28_v5 = vld [vmem:[#allocation2 + $0x4] sm:$0x3]  ;;  %v126_v6 = vld [vmem:[%s247_s1 + $0x2] ss:$0 sm:$0xff]  ;;  %p161_p6 = scmp.lt.s32.totalorder %s113_s17, %s113_s17 }
  0x11   :  { %v91_v7 = vadd.f32 %v125_v4, %v27_v2  ;;  %v92_v8 = vadd.f32 %v126_v6, %v28_v5  ;;  %v29_v9 = vld [vmem:[#allocation2 + $0x6] sm:$0x3]  ;;  %v127_v10 = vld [vmem:[%s247_s1 + $0x3] ss:$0 sm:$0xff]  ;;  %v30_v11 = vld [vmem:[#allocation2 + $0x8] sm:$0x3] }
  0x12   :  { %99 = vst.msk [vmem:[#allocation5] sm:$0x3] %vm98_vm0, %v90_v3  ;;  %v93_v12 = vadd.f32 %v127_v10, %v29_v9  ;;  %v128_v13 = vld [vmem:[%s247_s1 + $0x4] ss:$0 sm:$0xff]  ;;  %v31_v14 = vld [vmem:[#allocation2 + $0xa] sm:$0x3] }
  0x13   :  { %v129_v15 = vld [vmem:[%s247_s1 + $0x5] ss:$0 sm:$0xff]  ;;  %100 = vst.msk [vmem:[#allocation5 + $0x2] sm:$0x3] %vm98_vm0, %v91_v7  ;;  %101 = vst.msk [vmem:[#allocation5 + $0x4] sm:$0x3] %vm98_vm0, %v92_v8  ;;  %v94_v16 = vadd.f32 %v128_v13, %v30_v11 }
  0x14   :  { %v95_v17 = vadd.f32 %v129_v15, %v31_v14  ;;  %v32_v18 = vld [vmem:[#allocation2 + $0xc] sm:$0x3]  ;;  %v130_v19 = vld [vmem:[%s247_s1 + $0x6] ss:$0 sm:$0xff]  ;;  %v33_v20 = vld [vmem:[#allocation2 + $0xe] sm:$0x3] }
  0x15   :  { %102 = vst.msk [vmem:[#allocation5 + $0x6] sm:$0x3] %vm98_vm0, %v93_v12  ;;  %v96_v21 = vadd.f32 %v130_v19, %v32_v18  ;;  %v131_v22 = vld [vmem:[%s247_s1 + $0x7] ss:$0 sm:$0xff]  ;;  %103 = vst.msk [vmem:[#allocation5 + $0x8] sm:$0x3] %vm98_vm0, %v94_v16 }
  0x16   :  { %104 = vst.msk [vmem:[#allocation5 + $0xa] sm:$0x3] %vm98_vm0, %v95_v17  ;;  %v97_v23 = vadd.f32 %v131_v22, %v33_v20  ;;  %s156_s5 = scalar_lea.vmem %s113_s17, 256 }
  0x17   :  { %105 = vst.msk [vmem:[#allocation5 + $0xc] sm:$0x3] %vm98_vm0, %v96_v21  ;;  %p157_p5 = scmp.ne.s32.totalorder %s113_s17, %s156_s5  ;;  %p162_p7 = scmp.lt.s32.totalorder %s156_s5, %s156_s5 }
  0x18   :  { %106 = vst.msk [vmem:[#allocation5 + $0xe] sm:$0x3] %vm98_vm0, %v97_v23 }
  0x19   :  { %p163_p8 = por %p162_p7, %p161_p6 }
  0x1b   :  { %p164_p9 = pnand %p163_p8, %p157_p5 }
  0x1d   :  { %167 = shalt.err (!%p164_p9)
}
  0x1e   :  { %118 = dma.vmem_to_hbm [thread:$0]  %s113_s17, 256, %s248_s2, [#allocation4], %s181_s12, %s181_s12, %s182_s13  }
  0x1f   :  { %178 = dma.done.wait [#allocation4], 256  }
  0x20   :  { %179 = vsyncadd [#allocation4], 4294967040 }
  0x21   :  { %122 = vsyncpa [#allocation3], 1 }
  0x22   :  { %123 = vsyncpa [#allocation4], 1 }

</bundles_post_ra>
